<compile_context>
chip_gen: v6e
topology: v6e:2x2x1
jax: 0.10.0
libtpu: 0.0.40
codegen_flags: <defaults>
</compile_context>

<pallas_src>
import jax
import jax.numpy as jnp
from jax.experimental import pallas as pl
from jax.experimental.pallas import tpu as pltpu

_LANES = 128
_SUBLANES = 8
# Cap per-tile bytes so 2 (double-buffer) x 2 (in + out) tiles stay well inside
# v7x's 64 MiB VMEM while remaining multi-MiB (>=85% of HBM roofline on v6e).
_MAX_TILE_BYTES = 6 * 1024 * 1024


def _copy_kernel(x_ref, o_ref):
    # Identity on the current (tile_rows, 128) lane-dense tile.
    o_ref[...] = x_ref[...]


def _identity_copy_pallas(tensor):
    """Tuned Pallas identity copy of `tensor` (any shape)."""
    orig_shape = tensor.shape
    total = tensor.size

    if total == 0 or total % _LANES != 0:
        # Cannot form a lane-dense slab without padding; the op is an identity,
        # so just return the input (bit-exact, zero cost).
        return tensor

    rows = total // _LANES
    flat = tensor.reshape(rows, _LANES)

    # Largest row-tile (multiple of 8 sublanes) under the per-tile byte budget.
    bytes_per_row = _LANES * flat.dtype.itemsize
    max_rows_per_tile = max(_SUBLANES,
                            (_MAX_TILE_BYTES // bytes_per_row) // _SUBLANES * _SUBLANES)
    tile_rows = min(rows, max_rows_per_tile)

    # Keep >= 2 grid steps when the slab is large enough to split on an 8-row
    # boundary, so both v7x TensorCores issue DMAs concurrently.
    if tile_rows == rows and rows >= 2 * _SUBLANES:
        half = (-(-rows // 2) + _SUBLANES - 1) // _SUBLANES * _SUBLANES
        tile_rows = min(tile_rows, half)

    grid = (pl.cdiv(rows, tile_rows),)

    out_flat = pl.pallas_call(
        _copy_kernel,
        out_shape=jax.ShapeDtypeStruct((rows, _LANES), flat.dtype),
        grid=grid,
        in_specs=[pl.BlockSpec((tile_rows, _LANES), lambda r: (r, 0))],
        out_specs=pl.BlockSpec((tile_rows, _LANES), lambda r: (r, 0)),
        # Write the result into the input buffer — no second HBM allocation.
        input_output_aliases={0: 0},
        compiler_params=pltpu.CompilerParams(
            dimension_semantics=("parallel",),
            vmem_limit_bytes=64 << 20,
        ),
    )(flat)

    return out_flat.reshape(orig_shape)


def lstm_hidden_extractor(x):
    """Exact module semantics: return tuple element 0, zero data movement."""
    tensor, _ = x
    return tensor


def lstm_hidden_extractor_kernel(x):
    """Same semantics, but routed through the tuned Pallas identity-copy kernel
    (for when an explicit kernel pass over the tensor is required)."""
    tensor, _ = x
    return _identity_copy_pallas(tensor)


if __name__ == "__main__":
    key = jax.random.PRNGKey(0)
    k_out, k_h, k_c = jax.random.split(key, 3)

    batch, seq, hidden = 2, 8, 32

    # Deterministic synthetic "LSTM outputs": (output, (h_n, c_n)).
    lstm_output = jax.random.normal(k_out, (batch, seq, hidden), dtype=jnp.float32)
    h_n = jax.random.normal(k_h, (1, batch, hidden), dtype=jnp.float32)
    c_n = jax.random.normal(k_c, (1, batch, hidden), dtype=jnp.float32)

    x = (lstm_output, (h_n, c_n))

    # Fast path (what production code should use): zero-copy identity.
    out_fast = lstm_hidden_extractor(x)

    # Explicit Pallas kernel path.
    out_kernel = lstm_hidden_extractor_kernel(x)
    out_kernel = jax.block_until_ready(out_kernel)

    assert out_fast.shape == lstm_output.shape
    assert out_kernel.shape == lstm_output.shape
    assert bool(jnp.array_equal(out_fast, lstm_output))
    assert bool(jnp.array_equal(out_kernel, lstm_output))

    print("KERNEL_OK")
</pallas_src>

<mosaic_0001>
module attributes {stable_mosaic.version = 11 : i64} {
  func.func @_copy_kernel(%arg0: i32, %arg1: memref<4x128xf32, #tpu.memory_space<vmem>>, %arg2: memref<4x128xf32, #tpu.memory_space<vmem>>) attributes {dimension_semantics = [#tpu.dimension_semantics<parallel>], iteration_bounds = array<i64: 1>, scalar_prefetch = 0 : i64, scratch_operands = 0 : i64, tpu.core_type = #tpu.core_type<tc>, window_params = [{transform_indices = @transform_0, window_bounds = array<i64: 4, 128>}, {transform_indices = @transform_1, window_bounds = array<i64: 4, 128>}]} {
    %c0 = arith.constant 0 : index
    %c0_0 = arith.constant 0 : index
    %0 = vector.load %arg1[%c0, %c0_0] : memref<4x128xf32, #tpu.memory_space<vmem>>, vector<4x128xf32>
    %c0_1 = arith.constant 0 : index
    %c0_2 = arith.constant 0 : index
    %1 = vector.load %arg2[%c0_1, %c0_2] : memref<4x128xf32, #tpu.memory_space<vmem>>, vector<4x128xf32>
    tpu.vector_store %arg2[%c0_1, %c0_2], %0 {strides = array<i32>} : memref<4x128xf32, #tpu.memory_space<vmem>>, vector<4x128xf32>,
    return
  }
  func.func @transform_0(%arg0: i32) -> (i32, i32) {
    %c0_i32 = arith.constant 0 : i32
    %c0_i32_0 = arith.constant 0 : i32
    return %arg0, %c0_i32 : i32, i32
  }
  func.func @transform_1(%arg0: i32) -> (i32, i32) {
    %c0_i32 = arith.constant 0 : i32
    %c0_i32_0 = arith.constant 0 : i32
    return %arg0, %c0_i32 : i32, i32
  }
}

</mosaic_0001>

<bundles_post_ra>
// kernel: tpu_custom_call.1
= control target key start
LH: loop header
LB: loop body
LE: loop exit
PB: predicated region body
PF: predicated region fallthrough
CT: control target
= control target key end

     0   :  { %6 = vsyncpa [#allocation3], 0  ;;  %s102_s0 = inlined_call_operand.hbm [shape: f32[4,128], index: 0, kind: input, shape index: {}, may-alias: {0,1}]   ;;  %s103_s1 = inlined_call_operand.hbm [shape: f32[4,128], index: 1, kind: output, shape index: {}, may-alias: {0,1}]  }
   0x1   :  { %7 = vsyncpa [#allocation4], 0  ;;  %s84_s6 = smov [#allocation2]  }
   0x2   :  { %s14_s7 = sshll.u32 %s84_s6, 4  ;;  %s15_s7 = int_to_ptr.vmem [resolvable:$true] %s14_s7 }
   0x3   :  { %s48_s8 = scalar_lea.vmem %s15_s7, 64  ;;  %p53_p1 = scmp.lt.s32.totalorder %s15_s7, %s15_s7 }
   0x4   :  { %p49_p0 = scmp.ne.s32.totalorder %s15_s7, %s48_s8  ;;  %p54_p2 = scmp.lt.s32.totalorder %s48_s8, %s48_s8 }
   0x6   :  { %p55_p3 = por %p54_p2, %p53_p1 }
   0x8   :  { %p56_p4 = pnand %p55_p3, %p49_p0 }
   0xa   :  { %59 = shalt.err (!%p56_p4)
}
   0xb   :  { %17 = dma.hbm_to_vmem [thread:$0]  %s102_s0, 64, %s15_s7, [#allocation3]  }
   0xc   :  { %80 = dma.done.wait [#allocation3], 64  }
   0xd   :  { %81 = vsyncadd [#allocation3], 4294967232  ;;  %s85_s11 = smov [#allocation5]   ;;  %v21_v0 = vld [vmem:[#allocation2] sm:$0xf] }
   0xe   :  { %s29_s12 = sshll.u32 %s85_s11, 4  ;;  %22 = vst [vmem:[#allocation5] sm:$0xf] %v21_v0  ;;  %s30_s12 = int_to_ptr.vmem [resolvable:$true] %s29_s12 }
   0xf   :  { %s60_s13 = scalar_lea.vmem %s30_s12, 64  ;;  %p65_p6 = scmp.lt.s32.totalorder %s30_s12, %s30_s12 }
  0x10   :  { %p61_p5 = scmp.ne.s32.totalorder %s30_s12, %s60_s13  ;;  %p66_p7 = scmp.lt.s32.totalorder %s60_s13, %s60_s13 }
  0x12   :  { %p67_p8 = por %p66_p7, %p65_p6 }
  0x14   :  { %p68_p9 = pnand %p67_p8, %p61_p5 }
  0x16   :  { %71 = shalt.err (!%p68_p9)
}
  0x17   :  { %32 = dma.vmem_to_hbm [thread:$0]  %s30_s12, 64, %s103_s1, [#allocation4]  }
  0x18   :  { %82 = dma.done.wait [#allocation4], 64  }
  0x19   :  { %83 = vsyncadd [#allocation4], 4294967232 }
  0x1a   :  { %36 = vsyncpa [#allocation3], 1 }
  0x1b   :  { %37 = vsyncpa [#allocation4], 1 }

</bundles_post_ra>
